<compile_context>
chip_gen: v5e
topology: v5e:2x2
jax: 0.10.0
libtpu: 0.0.40
codegen_flags: <defaults>
</compile_context>

<pallas_src>
import functools

import jax
import jax.numpy as jnp
from jax.experimental import pallas as pl
from jax.experimental.pallas import tpu as pltpu


_DEFAULT_VMEM_BYTES = 64 * 1024 * 1024   # conservative default: v7x per-TC physical
_VMEM_HEADROOM = 12 * 1024 * 1024        # compiler-internal scratch / semaphores


@functools.lru_cache(maxsize=None)
def _vmem_limit_bytes():
    """Generation-aware VMEM limit: ~52 MiB on v7x (64 MiB physical),
    ~108 MiB on v5e/v6e (128 MiB physical)."""
    cap = _DEFAULT_VMEM_BYTES
    try:
        info = pltpu.get_tpu_info()
        queried = getattr(info, "vmem_capacity_bytes", None)
        if queried:
            cap = int(queried)
    except Exception:
        pass
    return max(min(cap - _VMEM_HEADROOM, int(0.85 * cap)), 16 * 1024 * 1024)


def _slab_unroll(n, tc, hw):
    # Fully unroll the per-batch slab loop only when the slab is vreg-scale;
    # for large slabs unrolling would keep several slab-sized temporaries live
    # in VMEM and risk blowing the limit.
    return bool(n <= 8 and tc * hw <= 16 * 1024)


# ----------------------------------------------------------------------------
# Path 1: single HBM pass — the whole (N, tc, HW) channel strip is VMEM-resident.
# ----------------------------------------------------------------------------
def _bn_fused_kernel(x_ref, w_ref, b_ref, o_ref, *, eps):
    # x_ref/o_ref: (N, tc, HW) in native NCHW order; w_ref/b_ref: (tc, 1).
    n, tc, hw = x_ref.shape
    inv_count = 1.0 / float(n * hw)
    unroll = _slab_unroll(n, tc, hw)

    # Sweep 1: per-channel sum and sum-of-squares, one (tc, HW) slab at a time
    # (no block-sized f32 temporaries).
    def stats_body(i, carry):
        s, q = carry
        xi = x_ref[i].astype(jnp.float32)                       # (tc, HW) slab
        s = s + jnp.sum(xi, axis=1, keepdims=True)
        q = q + jnp.sum(xi * xi, axis=1, keepdims=True)
        return s, q

    zeros = jnp.zeros((tc, 1), jnp.float32)
    s, q = jax.lax.fori_loop(0, n, stats_body, (zeros, zeros), unroll=unroll)

    mean = s * inv_count                                        # (tc, 1)
    # Single-sweep moments with f32 accumulation; clamp guards round-off.
    # TODO(synk): switch back to the centered two-sweep variance if inputs can
    # be badly conditioned (huge mean relative to std).
    var = jnp.maximum(q * inv_count - mean * mean, 0.0)
    inv_std = jax.lax.rsqrt(var + eps)

    # Fold the affine into per-channel scale/shift: the full-tile work below
    # is a single multiply + add per element.
    scale = inv_std * w_ref[...].astype(jnp.float32)            # (tc, 1)
    shift = b_ref[...].astype(jnp.float32) - mean * scale       # (tc, 1)

    # Sweep 2: normalize, again one slab at a time.
    def norm_body(i, carry):
        xi = x_ref[i].astype(jnp.float32)
        o_ref[i] = (xi * scale + shift).astype(o_ref.dtype)
        return carry

    jax.lax.fori_loop(0, n, norm_body, 0, unroll=unroll)


# ----------------------------------------------------------------------------
# Path 2 (fallback when a full-N strip doesn't fit VMEM): stats + normalize.
# ----------------------------------------------------------------------------
def _bn_stats_kernel(x_ref, w_ref, b_ref, scale_ref, shift_ref, sum_sc, sq_sc,
                     *, eps, total_count):
    # x_ref: (nb, tc, HW); outputs/scratch: (tc, 1).  Batch axis is the last
    # (sequential, "arbitrary") grid axis; accumulate sum / sum-of-squares in
    # persistent f32 scratch and finalize scale/shift at the last batch step.
    nbi = pl.program_id(1)
    nb, tc, hw = x_ref.shape
    unroll = _slab_unroll(nb, tc, hw)

    @pl.when(nbi == 0)
    def _():
        sum_sc[...] = jnp.zeros_like(sum_sc)
        sq_sc[...] = jnp.zeros_like(sq_sc)

    def body(i, carry):
        s, q = carry
        xi = x_ref[i].astype(jnp.float32)                       # (tc, HW) slab
        s = s + jnp.sum(xi, axis=1, keepdims=True)
        q = q + jnp.sum(xi * xi, axis=1, keepdims=True)
        return s, q

    s, q = jax.lax.fori_loop(0, nb, body, (sum_sc[...], sq_sc[...]),
                             unroll=unroll)
    sum_sc[...] = s
    sq_sc[...] = q

    @pl.when(nbi == pl.num_programs(1) - 1)
    def _():
        inv_count = 1.0 / float(total_count)
        mean = s * inv_count
        var = jnp.maximum(q * inv_count - mean * mean, 0.0)
        inv_std = jax.lax.rsqrt(var + eps)
        scale = inv_std * w_ref[...].astype(jnp.float32)
        scale_ref[...] = scale
        shift_ref[...] = b_ref[...].astype(jnp.float32) - mean * scale


def _bn_normalize_kernel(x_ref, scale_ref, shift_ref, o_ref):
    # x_ref/o_ref: (nb, tc, HW); scale/shift: (tc, 1).
    nb, tc, hw = x_ref.shape
    unroll = _slab_unroll(nb, tc, hw)
    scale = scale_ref[...]
    shift = shift_ref[...]

    def body(i, carry):
        xi = x_ref[i].astype(jnp.float32)
        o_ref[i] = (xi * scale + shift).astype(o_ref.dtype)
        return carry

    jax.lax.fori_loop(0, nb, body, 0, unroll=unroll)


# ----------------------------------------------------------------------------
# Tiling heuristics
# ----------------------------------------------------------------------------
def _channel_tile_candidates(C):
    # (8, 128) rule: tc must be a multiple of 8 dividing C, or the full C
    # (a full-dim block is always legal, e.g. the C=4 example).
    return sorted({t for t in range(8, C + 1, 8) if C % t == 0} | {C})


def _divisors(n):
    return [d for d in range(1, n + 1) if n % d == 0]


def _fused_footprint_bytes(N, tc, HW, itemsize):
    io_block = N * tc * HW * itemsize        # one input block == one output block
    slab_f32 = tc * HW * 4                   # live f32 slab(s) inside the loops
    return 4 * io_block + 4 * slab_f32 + 64 * tc


def _stream_footprint_bytes(nb, tc, HW, itemsize):
    io_block = nb * tc * HW * itemsize
    slab_f32 = tc * HW * 4
    return 4 * io_block + 4 * slab_f32 + 64 * tc


def _pick_fused_tc(cands, N, C, HW, itemsize, budget,
                   min_steps=6, min_block_bytes=1 << 20):
    fit = [t for t in cands if _fused_footprint_bytes(N, t, HW, itemsize) <= budget]
    if not fit:
        return None

    def key(t):
        steps = C // t
        bb = N * t * HW * itemsize
        return (steps >= min_steps,      # enough steps to hide the strip DMA (>=3/TC on v7x)
                steps >= 2,              # at least double-buffered
                bb >= min_block_bytes,   # big-enough DMAs (amortize ~0.35 us/step)
                steps % 2 == 0,          # balanced work for v7x's 2 TensorCores
                bb)                      # then the largest block

    return max(fit, key=key)


# ----------------------------------------------------------------------------
# Wrapper
# ----------------------------------------------------------------------------
def meta_batch_norm2d(x, weight, bias, eps=1e-5, *, force_two_pass=False):
    """Training-mode BatchNorm2d forward. x: (N, C, H, W); weight, bias: (C,)."""
    N, C, H, W = x.shape
    HW = H * W
    itemsize = jnp.dtype(x.dtype).itemsize
    total = N * C * HW

    vmem_limit = _vmem_limit_bytes()
    budget = int(0.9 * vmem_limit)

    x3 = x.reshape(N, C, HW)                 # free contiguous reshape (no copy)
    w2 = weight.reshape(C, 1).astype(jnp.float32)
    b2 = bias.reshape(C, 1).astype(jnp.float32)
    cands = _channel_tile_candidates(C)

    # NOTE: when HW is not a multiple of 128 (e.g. 7x7, 14x14) output stores
    # are lane-masked and lane utilization drops to (HW % 128)/128.
    # TODO(synk): pad HW (or fold N into the lane axis) if such layers dominate.

    # ---- Path 1: single HBM pass, full (N, tc, HW) strip resident in VMEM --
    if not force_two_pass:
        tc = _pick_fused_tc(cands, N, C, HW, itemsize, budget)
        if tc is not None:
            out3 = pl.pallas_call(
                functools.partial(_bn_fused_kernel, eps=eps),
                out_shape=jax.ShapeDtypeStruct((N, C, HW), x.dtype),
                grid=(C // tc,),
                in_specs=[
                    pl.BlockSpec((N, tc, HW), lambda j: (0, j, 0)),
                    pl.BlockSpec((tc, 1), lambda j: (j, 0)),
                    pl.BlockSpec((tc, 1), lambda j: (j, 0)),
                ],
                out_specs=pl.BlockSpec((N, tc, HW), lambda j: (0, j, 0)),
                compiler_params=pltpu.CompilerParams(
                    dimension_semantics=("parallel",),
                    vmem_limit_bytes=vmem_limit),
                cost_estimate=pl.CostEstimate(
                    flops=5 * total, transcendentals=C,
                    bytes_accessed=2 * total * itemsize + 8 * C),
            )(x3, w2, b2)
            return out3.reshape(N, C, H, W)

    # ---- Path 2: two passes (stats then normalize), streaming blocks -------
    tc_fit = [t for t in cands
              if _stream_footprint_bytes(1, t, HW, itemsize) <= budget]
    if tc_fit:
        # Prefer >=2 (ideally even) channel tiles so v7x's 2 TCs both work the
        # stats pass, then the largest tile.
        tc = max(tc_fit, key=lambda t: (C // t >= 2, (C // t) % 2 == 0, t))
    else:
        tc = min(cands)
        # TODO(synk): if even a (1, min_tc, HW) block exceeds VMEM, additionally
        # tile the H*W axis (multiple-of-128 sub-blocks) in both passes.

    nb_fit = [d for d in _divisors(N)
              if _stream_footprint_bytes(d, tc, HW, itemsize) <= budget]
    nb = max(nb_fit) if nb_fit else 1
    nct, nbt = C // tc, N // nb

    scale, shift = pl.pallas_call(
        functools.partial(_bn_stats_kernel, eps=eps, total_count=N * HW),
        out_shape=(jax.ShapeDtypeStruct((C, 1), jnp.float32),
                   jax.ShapeDtypeStruct((C, 1), jnp.float32)),
        grid=(nct, nbt),                      # reduction (batch) axis last
        in_specs=[
            pl.BlockSpec((nb, tc, HW), lambda j, n: (n, j, 0)),
            pl.BlockSpec((tc, 1), lambda j, n: (j, 0)),
            pl.BlockSpec((tc, 1), lambda j, n: (j, 0)),
        ],
        out_specs=(pl.BlockSpec((tc, 1), lambda j, n: (j, 0)),
                   pl.BlockSpec((tc, 1), lambda j, n: (j, 0))),
        scratch_shapes=[pltpu.VMEM((tc, 1), jnp.float32),
                        pltpu.VMEM((tc, 1), jnp.float32)],
        compiler_params=pltpu.CompilerParams(
            dimension_semantics=("parallel", "arbitrary"),
            vmem_limit_bytes=vmem_limit),
        cost_estimate=pl.CostEstimate(
            flops=3 * total, transcendentals=C,
            bytes_accessed=total * itemsize + 16 * C),
    )(x3, w2, b2)

    out3 = pl.pallas_call(
        _bn_normalize_kernel,
        out_shape=jax.ShapeDtypeStruct((N, C, HW), x.dtype),
        grid=(nct, nbt),
        in_specs=[
            pl.BlockSpec((nb, tc, HW), lambda j, n: (n, j, 0)),
            pl.BlockSpec((tc, 1), lambda j, n: (j, 0)),
            pl.BlockSpec((tc, 1), lambda j, n: (j, 0)),
        ],
        out_specs=pl.BlockSpec((nb, tc, HW), lambda j, n: (n, j, 0)),
        compiler_params=pltpu.CompilerParams(
            dimension_semantics=("parallel", "parallel"),
            vmem_limit_bytes=vmem_limit),
        cost_estimate=pl.CostEstimate(
            flops=2 * total, transcendentals=0,
            bytes_accessed=2 * total * itemsize + 8 * C),
    )(x3, scale, shift)
    return out3.reshape(N, C, H, W)


def _reference(x, weight, bias, eps=1e-5):
    mean = jnp.mean(x, axis=(0, 2, 3), keepdims=True)
    var = jnp.var(x, axis=(0, 2, 3), keepdims=True)  # biased, like F.batch_norm train
    xn = (x - mean) / jnp.sqrt(var + eps)
    return xn * weight.reshape(1, -1, 1, 1) + bias.reshape(1, -1, 1, 1)


if __name__ == "__main__":
    key = jax.random.PRNGKey(0)
    kx, kw, kb = jax.random.split(key, 3)

    N, C, H, W = 2, 4, 16, 16
    x = jax.random.normal(kx, (N, C, H, W), dtype=jnp.float32)

    # nn.BatchNorm2d default init is weight=1, bias=0; use deterministic random
    # affine params so the scale/shift path is actually exercised.
    weight = 1.0 + 0.1 * jax.random.normal(kw, (C,), dtype=jnp.float32)
    bias = 0.1 * jax.random.normal(kb, (C,), dtype=jnp.float32)
    # TODO(synk): running_mean/running_var momentum EMA updates are a training
    # side effect and do not affect the forward output; not emitted.

    ref = _reference(x, weight, bias, eps=1e-5)

    # Primary (single-pass, VMEM-resident) path.
    out = jax.block_until_ready(meta_batch_norm2d(x, weight, bias, eps=1e-5))
    assert out.shape == (N, C, H, W)
    assert jnp.allclose(out, ref, atol=1e-5, rtol=1e-5)

    # Also exercise the large-shape two-pass fallback on the same small data.
    out2 = jax.block_until_ready(
        meta_batch_norm2d(x, weight, bias, eps=1e-5, force_two_pass=True))
    assert jnp.allclose(out2, ref, atol=1e-5, rtol=1e-5)

    print("KERNEL_OK")
</pallas_src>

<mosaic_0001>
module attributes {stable_mosaic.version = 11 : i64} {
  func.func @_bn_fused_kernel(%arg0: i32, %arg1: memref<2x4x256xf32, #tpu.memory_space<vmem>>, %arg2: memref<4x1xf32, #tpu.memory_space<vmem>>, %arg3: memref<4x1xf32, #tpu.memory_space<vmem>>, %arg4: memref<2x4x256xf32, #tpu.memory_space<vmem>>) attributes {dimension_semantics = [#tpu.dimension_semantics<parallel>], iteration_bounds = array<i64: 1>, scalar_prefetch = 0 : i64, scratch_operands = 0 : i64, tpu.core_type = #tpu.core_type<tc>, window_params = [{transform_indices = @transform_0, window_bounds = array<i64: 2, 4, 256>}, {transform_indices = @transform_1, window_bounds = array<i64: 4, 1>}, {transform_indices = @transform_2, window_bounds = array<i64: 4, 1>}, {transform_indices = @transform_3, window_bounds = array<i64: 2, 4, 256>}]} {
    %cst = arith.constant 0.000000e+00 : f32
    %0 = vector.broadcast %cst : f32 to vector<4x1xf32>
    %c0_i32 = arith.constant 0 : i32
    %1 = arith.index_cast %c0_i32 : i32 to index
    %c0 = arith.constant 0 : index
    %c0_0 = arith.constant 0 : index
    %2 = vector.load %arg1[%1, %c0, %c0_0] : memref<2x4x256xf32, #tpu.memory_space<vmem>>, vector<1x4x256xf32>
    %3 = vector.shape_cast %2 : vector<1x4x256xf32> to vector<4x256xf32>
    %cst_1 = arith.constant dense<0.000000e+00> : vector<4xf32>
    %4 = vector.multi_reduction <add>, %3, %cst_1 [1] : vector<4x256xf32> to vector<4xf32>
    %5 = vector.shape_cast %4 : vector<4xf32> to vector<4x1xf32>
    %6 = arith.addf %0, %5 : vector<4x1xf32>
    %7 = arith.mulf %3, %3 : vector<4x256xf32>
    %cst_2 = arith.constant dense<0.000000e+00> : vector<4xf32>
    %8 = vector.multi_reduction <add>, %7, %cst_2 [1] : vector<4x256xf32> to vector<4xf32>
    %9 = vector.shape_cast %8 : vector<4xf32> to vector<4x1xf32>
    %10 = arith.addf %0, %9 : vector<4x1xf32>
    %c1_i32 = arith.constant 1 : i32
    %11 = arith.index_cast %c1_i32 : i32 to index
    %c0_3 = arith.constant 0 : index
    %c0_4 = arith.constant 0 : index
    %12 = vector.load %arg1[%11, %c0_3, %c0_4] : memref<2x4x256xf32, #tpu.memory_space<vmem>>, vector<1x4x256xf32>
    %13 = vector.shape_cast %12 : vector<1x4x256xf32> to vector<4x256xf32>
    %cst_5 = arith.constant dense<0.000000e+00> : vector<4xf32>
    %14 = vector.multi_reduction <add>, %13, %cst_5 [1] : vector<4x256xf32> to vector<4xf32>
    %15 = vector.shape_cast %14 : vector<4xf32> to vector<4x1xf32>
    %16 = arith.addf %6, %15 : vector<4x1xf32>
    %17 = arith.mulf %13, %13 : vector<4x256xf32>
    %cst_6 = arith.constant dense<0.000000e+00> : vector<4xf32>
    %18 = vector.multi_reduction <add>, %17, %cst_6 [1] : vector<4x256xf32> to vector<4xf32>
    %19 = vector.shape_cast %18 : vector<4xf32> to vector<4x1xf32>
    %20 = arith.addf %10, %19 : vector<4x1xf32>
    %c2_i32 = arith.constant 2 : i32
    %cst_7 = arith.constant 0.001953125 : f32
    %21 = vector.broadcast %cst_7 : f32 to vector<4x1xf32>
    %22 = arith.mulf %16, %21 : vector<4x1xf32>
    %cst_8 = arith.constant 0.001953125 : f32
    %23 = vector.broadcast %cst_8 : f32 to vector<4x1xf32>
    %24 = arith.mulf %20, %23 : vector<4x1xf32>
    %25 = arith.mulf %22, %22 : vector<4x1xf32>
    %26 = arith.subf %24, %25 : vector<4x1xf32>
    %cst_9 = arith.constant 0.000000e+00 : f32
    %27 = vector.broadcast %cst_9 : f32 to vector<4x1xf32>
    %28 = arith.maximumf %26, %27 : vector<4x1xf32>
    %cst_10 = arith.constant 9.99999974E-6 : f32
    %29 = vector.broadcast %cst_10 : f32 to vector<4x1xf32>
    %30 = arith.addf %28, %29 : vector<4x1xf32>
    %31 = math.rsqrt %30 : vector<4x1xf32>
    %c0_11 = arith.constant 0 : index
    %c0_12 = arith.constant 0 : index
    %32 = vector.load %arg2[%c0_11, %c0_12] : memref<4x1xf32, #tpu.memory_space<vmem>>, vector<4x1xf32>
    %33 = arith.mulf %31, %32 : vector<4x1xf32>
    %c0_13 = arith.constant 0 : index
    %c0_14 = arith.constant 0 : index
    %34 = vector.load %arg3[%c0_13, %c0_14] : memref<4x1xf32, #tpu.memory_space<vmem>>, vector<4x1xf32>
    %35 = arith.mulf %22, %33 : vector<4x1xf32>
    %36 = arith.subf %34, %35 : vector<4x1xf32>
    %c0_i32_15 = arith.constant 0 : i32
    %37 = arith.index_cast %c0_i32_15 : i32 to index
    %c0_16 = arith.constant 0 : index
    %c0_17 = arith.constant 0 : index
    %38 = vector.load %arg1[%37, %c0_16, %c0_17] : memref<2x4x256xf32, #tpu.memory_space<vmem>>, vector<1x4x256xf32>
    %39 = vector.shape_cast %38 : vector<1x4x256xf32> to vector<4x256xf32>
    %40 = vector.broadcast %33 : vector<4x1xf32> to vector<4x256xf32>
    %41 = arith.mulf %39, %40 : vector<4x256xf32>
    %42 = vector.broadcast %36 : vector<4x1xf32> to vector<4x256xf32>
    %43 = arith.addf %41, %42 : vector<4x256xf32>
    %44 = arith.index_cast %c0_i32_15 : i32 to index
    %c0_18 = arith.constant 0 : index
    %c0_19 = arith.constant 0 : index
    %45 = vector.load %arg4[%44, %c0_18, %c0_19] : memref<2x4x256xf32, #tpu.memory_space<vmem>>, vector<1x4x256xf32>
    %46 = vector.shape_cast %45 : vector<1x4x256xf32> to vector<4x256xf32>
    %47 = vector.shape_cast %43 : vector<4x256xf32> to vector<1x4x256xf32>
    tpu.vector_store %arg4[%44, %c0_18, %c0_19], %47 {strides = array<i32>} : memref<2x4x256xf32, #tpu.memory_space<vmem>>, vector<1x4x256xf32>,
    %c1_i32_20 = arith.constant 1 : i32
    %48 = arith.index_cast %c1_i32_20 : i32 to index
    %c0_21 = arith.constant 0 : index
    %c0_22 = arith.constant 0 : index
    %49 = vector.load %arg1[%48, %c0_21, %c0_22] : memref<2x4x256xf32, #tpu.memory_space<vmem>>, vector<1x4x256xf32>
    %50 = vector.shape_cast %49 : vector<1x4x256xf32> to vector<4x256xf32>
    %51 = vector.broadcast %33 : vector<4x1xf32> to vector<4x256xf32>
    %52 = arith.mulf %50, %51 : vector<4x256xf32>
    %53 = vector.broadcast %36 : vector<4x1xf32> to vector<4x256xf32>
    %54 = arith.addf %52, %53 : vector<4x256xf32>
    %55 = arith.index_cast %c1_i32_20 : i32 to index
    %c0_23 = arith.constant 0 : index
    %c0_24 = arith.constant 0 : index
    %56 = vector.load %arg4[%55, %c0_23, %c0_24] : memref<2x4x256xf32, #tpu.memory_space<vmem>>, vector<1x4x256xf32>
    %57 = vector.shape_cast %56 : vector<1x4x256xf32> to vector<4x256xf32>
    %58 = vector.shape_cast %54 : vector<4x256xf32> to vector<1x4x256xf32>
    tpu.vector_store %arg4[%55, %c0_23, %c0_24], %58 {strides = array<i32>} : memref<2x4x256xf32, #tpu.memory_space<vmem>>, vector<1x4x256xf32>,
    %c2_i32_25 = arith.constant 2 : i32
    return
  }
  func.func @transform_0(%arg0: i32) -> (i32, i32, i32) {
    %c0_i32 = arith.constant 0 : i32
    %c0_i32_0 = arith.constant 0 : i32
    %c0_i32_1 = arith.constant 0 : i32
    return %c0_i32, %arg0, %c0_i32_0 : i32, i32, i32
  }
  func.func @transform_1(%arg0: i32) -> (i32, i32) {
    %c0_i32 = arith.constant 0 : i32
    %c0_i32_0 = arith.constant 0 : i32
    return %arg0, %c0_i32 : i32, i32
  }
  func.func @transform_2(%arg0: i32) -> (i32, i32) {
    %c0_i32 = arith.constant 0 : i32
    %c0_i32_0 = arith.constant 0 : i32
    return %arg0, %c0_i32 : i32, i32
  }
  func.func @transform_3(%arg0: i32) -> (i32, i32, i32) {
    %c0_i32 = arith.constant 0 : i32
    %c0_i32_0 = arith.constant 0 : i32
    %c0_i32_1 = arith.constant 0 : i32
    return %c0_i32, %arg0, %c0_i32_0 : i32, i32, i32
  }
}

</mosaic_0001>

<bundles_post_ra>
// kernel: tpu_custom_call.1
= control target key start
LH: loop header
LB: loop body
LE: loop exit
PB: predicated region body
PF: predicated region fallthrough
CT: control target
= control target key end

     0   :  { %8 = vsyncpa [#allocation3], 0  ;;  %s271_s0 = inlined_call_operand.hbm [shape: f32[2,4,256], index: 0, kind: input, shape index: {}]   ;;  %s272_s1 = inlined_call_operand.vmem [shape: f32[4,1], index: 1, kind: input, shape index: {}]   ;;  %s273_s2 = inlined_call_operand.vmem [shape: f32[4,1], index: 2, kind: input, shape index: {}]   ;;  %s274_s3 = inlined_call_operand.hbm [shape: f32[2,4,256], index: 3, kind: output, shape index: {}]  }
   0x1   :  { %9 = vsyncpa [#allocation4], 0  ;;  %s14_s14 = sshll.u32 %s271_s0, 4  ;;  %s213_s15 = smov [#allocation2]   ;;  %s15_s14 = int_to_ptr.hbm [resolvable:$true] %s14_s14 }
   0x2   :  { %s16_s16 = sshll.u32 %s213_s15, 4  ;;  %s214_s17 = smov 128   ;;  %s17_s16 = int_to_ptr.vmem [resolvable:$true] %s16_s16 }
   0x3   :  { %s215_s18 = smov 8  }
   0x4   :  { %22 = dma.hbm_to_vmem [thread:$0]  %s15_s14, 256, %s17_s16, [#allocation3], %s214_s17, %s214_s17, %s215_s18  }
   0x5   :  { %209 = dma.done.wait [#allocation3], 256  }
   0x6   :  { %210 = vsyncadd [#allocation3], 4294967040  ;;  %v245_v0 = vld [vmem:[#allocation2] sm:$0xff]  ;;  %vm38_vm0 = vcmask 1043456   ;;  %v59_v7 = vld [vmem:[#allocation2 + $0x8] sm:$0xff]  ;;  %v216_v25 = vmov 0  }
   0x7   :  { %33 = vst [vmem:[#allocation1] ss:$2 sm:$0xff] %v245_v0  ;;  %v45_v1 = vmul.f32 %v245_v0, %v245_v0  ;;  %v72_v13 = vmul.f32 %v59_v7, %v59_v7  ;;  %157 = vset.pattern.permute.xlu2 %v216_v25  ;;  %158 = vset.pattern.permute.xlu0 %v216_v25  ;;  %v101_v43 = vld [vmem:[%s272_s1] sm:$0xf]  ;;  %v217_v49 = vmov 839922192  }
   0x8   :  { %v103_v47 = vld [vmem:[%s273_s2] sm:$0xf]  ;;  %v111_v50 = vunpack.c.l.s4 %v217_v49  ;;  %s218_s1 = smov [#allocation5]   ;;  %s138_s25 = sshll.u32 %s274_s3, 4  ;;  %s139_s25 = int_to_ptr.hbm [resolvable:$true] %s138_s25 }
   0x9   :  { %s136_s22 = sshll.u32 %s218_s1, 4  ;;  %s137_s22 = int_to_ptr.vmem [resolvable:$true] %s136_s22 }
   0xa   :  { %v112_v52 = vunpack.c.0.s8 %v111_v50 }
   0xe   :  { %v34_v2 = vld.sshfl [vmem:[#allocation1] sm:$0xff pattern:$0x75316420]  ;;  %v35_v3 = vld.sshfl [vmem:[#allocation1 + $0x8] sm:$0xff pattern:$0x75316420] }
   0xf   :  { %v39_v4 = vsel %vm38_vm0, %v34_v2, 0.0  ;;  %v40_v5 = vsel %vm38_vm0, %v35_v3, 0.0  ;;  %47 = vst [vmem:[#allocation1] ss:$2 sm:$0xff] %v45_v1 }
  0x10   :  { %v41_v6 = vadd.f32 %v40_v5, %v39_v4 }
  0x12   :  { %42 = vadd.xlane.f32.xlu0 %v41_v6 }
  0x16   :  { %v48_v8 = vld.sshfl [vmem:[#allocation1] sm:$0xff pattern:$0x75316420]  ;;  %v49_v9 = vld.sshfl [vmem:[#allocation1 + $0x8] sm:$0xff pattern:$0x75316420] }
  0x17   :  { %v52_v10 = vsel %vm38_vm0, %v48_v8, 0.0  ;;  %v53_v11 = vsel %vm38_vm0, %v49_v9, 0.0  ;;  %61 = vst [vmem:[#allocation1] ss:$2 sm:$0xff] %v59_v7 }
  0x18   :  { %v54_v12 = vadd.f32 %v53_v11, %v52_v10 }
  0x1a   :  { %55 = vadd.xlane.f32.xlu1 %v54_v12 }
  0x1e   :  { %v62_v14 = vld.sshfl [vmem:[#allocation1] sm:$0xff pattern:$0x75316420]  ;;  %v63_v15 = vld.sshfl [vmem:[#allocation1 + $0x8] sm:$0xff pattern:$0x75316420] }
  0x1f   :  { %v66_v16 = vsel %vm38_vm0, %v62_v14, 0.0  ;;  %v67_v17 = vsel %vm38_vm0, %v63_v15, 0.0  ;;  %74 = vst [vmem:[#allocation1] ss:$2 sm:$0xff] %v72_v13 }
  0x20   :  { %v68_v18 = vadd.f32 %v67_v17, %v66_v16 }
  0x22   :  { %69 = vadd.xlane.f32.xlu0 %v68_v18 }
  0x26   :  { %v75_v19 = vld.sshfl [vmem:[#allocation1] sm:$0xff pattern:$0x75316420]  ;;  %v76_v20 = vld.sshfl [vmem:[#allocation1 + $0x8] sm:$0xff pattern:$0x75316420] }
  0x27   :  { %v79_v21 = vsel %vm38_vm0, %v75_v19, 0.0  ;;  %v80_v22 = vsel %vm38_vm0, %v76_v20, 0.0 }
  0x28   :  { %v81_v23 = vadd.f32 %v80_v22, %v79_v21 }
  0x2a   :  { %82 = vadd.xlane.f32.xlu1 %v81_v23 }
  0x85   :  { %v43_v24 = vpop.xlane.xlu0 %42 }
  0x8d   :  { %v56_v26 = vpop.xlane.xlu1 %55 }
  0x95   :  { %v70_v27 = vpop.xlane.xlu0 %69 }
  0x96   :  { %v71_v28 = vadd.f32 %v70_v27, %v43_v24 }
  0x98   :  { %v85_v29 = vmul.f32 0.001953125, %v71_v28 }
  0x9a   :  { %v87_v32 = vmul.f32 %v85_v29, %v85_v29 }
  0x9d   :  { %v83_v30 = vpop.xlane.xlu1 %82 }
  0x9e   :  { %v84_v31 = vadd.f32 %v83_v30, %v56_v26 }
  0xa0   :  { %v86_v33 = vmul.f32 0.001953125, %v84_v31 }
  0xa2   :  { %v88_v34 = vsub.f32 %v86_v33, %v87_v32 }
  0xa4   :  { %v89_v35 = vmax.f32 %v88_v34, 0.0 }
  0xa6   :  { %v90_v36 = vadd.f32 1e-05, %v89_v35 }
  0xa8   :  { %159 = vrsqrt.f32 %v90_v36  ;;  %vm97_vm2 = vweird.f32 %v90_v36 }
  0xae   :  { %v160_v37 = vpop.eup %159 }
  0xaf   :  { %v92_v38 = vmul.f32 %v160_v37, %v90_v36  ;;  %vm98_vm1 = vweird.f32 %v160_v37 }
  0xb0   :  { %vm99_vm3 = vmor %vm97_vm2, %vm98_vm1 }
  0xb1   :  { %v93_v39 = vmul.f32 %v160_v37, %v92_v38 }
  0xb3   :  { %v94_v40 = vmul.f32 0.5, %v93_v39 }
  0xb5   :  { %v95_v41 = vsub.f32 1.5, %v94_v40 }
  0xb7   :  { %v96_v42 = vmul.f32 %v160_v37, %v95_v41 }
  0xb9   :  { %v100_v44 = vsel %vm99_vm3, %v160_v37, %v96_v42 }
  0xba   :  { %v102_v45 = vmul.f32 %v101_v43, %v100_v44 }
  0xbc   :  { %108 = vperm.xlu2 %157, %v102_v45   ;;  %v104_v46 = vmul.f32 %v102_v45, %v85_v29 }
  0xbe   :  { %v105_v48 = vsub.f32 %v103_v47, %v104_v46 }
  0xc4   :  { %118 = vperm.xlu2 %157, %v105_v48  }
 0x116   :  { %v109_v51 = vpop.permute.xlu2 %108 }
 0x117   :  { %v113_v53 = vperm.slane %v109_v51, %v112_v52 }
 0x119   :  { %v115_v55 = vmul.f32 %v113_v53, %v245_v0  ;;  %v128_v56 = vmul.f32 %v113_v53, %v59_v7 }
 0x11e   :  { %v119_v54 = vpop.permute.xlu2 %118 }
 0x11f   :  { %v123_v57 = vperm.slane %v119_v54, %v112_v52 }
 0x121   :  { %v125_v58 = vadd.f32 %v123_v57, %v115_v55  ;;  %v129_v59 = vadd.f32 %v128_v56, %v123_v57 }
 0x123   :  { %126 = vst [vmem:[#allocation5] sm:$0xff] %v125_v58 }
 0x124   :  { %131 = vst [vmem:[#allocation5 + $0x8] sm:$0xff] %v129_v59 }
 0x125   :  { %144 = dma.vmem_to_hbm [thread:$0]  %s137_s22, 256, %s139_s25, [#allocation4], %s214_s17, %s214_s17, %s215_s18  }
 0x126   :  { %211 = dma.done.wait [#allocation4], 256  }
 0x127   :  { %212 = vsyncadd [#allocation4], 4294967040 }
 0x128   :  { %149 = vsyncpa [#allocation3], 1 }
 0x129   :  { %150 = vsyncpa [#allocation4], 1 }

</bundles_post_ra>
